<compile_context>
chip_gen: v5e
topology: v5e:2x2
jax: 0.10.0
libtpu: 0.0.40
codegen_flags: <defaults>
</compile_context>

<pallas_src>
import functools

import jax
import jax.numpy as jnp
from jax.experimental import pallas as pl
from jax.experimental.pallas import tpu as pltpu


def _trelu_kernel(a_ref, x_ref, o_ref, *, tile_rows):
    """a_ref: (rows, 1) resident |bias| column; x_ref/o_ref: (tile_rows, HW)."""
    i = pl.program_id(0)
    r0 = pl.multiple_of(i * tile_rows, tile_rows)
    a = a_ref[pl.ds(r0, tile_rows), :]           # (tile_rows, 1), lane-broadcast
    x = x_ref[...]
    # 2-op compare/select == relu(x-a) + a*sign(relu(x-a)) for finite inputs.
    o_ref[...] = jnp.where(x > a, x, jnp.zeros_like(x))


def _pick_tile_rows(rows, hw, itemsize, target_block_bytes):
    """Largest sublane-aligned divisor of `rows` whose x block ~= target bytes."""
    sublane = max(8, 32 // itemsize)             # 8 (f32), 16 (bf16), 32 (int8)
    cand = (target_block_bytes // max(1, hw * itemsize)) // sublane * sublane
    cand = max(sublane, min(cand, rows))
    while cand >= sublane and rows % cand != 0:
        cand -= sublane
    if cand < sublane or rows % cand != 0:
        return rows                              # single full-rows block (legal)
    if cand == rows and rows // 2 >= sublane and (rows // 2) % sublane == 0:
        cand = rows // 2                         # give v7x's 2 TCs both some work
    return cand


def trelu_with_trainable_bias(x, bias, *, target_block_bytes=2 << 20):
    """x: (N, C, H, W), bias: (1, C, 1, 1). Returns same shape/dtype as x."""
    N, C, H, W = x.shape
    HW = H * W
    rows = N * C
    itemsize = jnp.dtype(x.dtype).itemsize

    # Hoist |bias| out of the kernel: one scalar threshold per (n, c) row.
    a_row = jnp.tile(jnp.abs(bias).astype(x.dtype).reshape(C), N).reshape(rows, 1)

    x2 = x.reshape(rows, HW)

    tile_rows = _pick_tile_rows(rows, HW, itemsize, target_block_bytes)
    grid = (rows // tile_rows,)

    # NOTE: block last dim == full HW, so the spec is always legal; when
    # HW % 128 != 0 stores are masked (perf-only) -- pad HW in the caller if
    # that ever shows up on the store path.
    out2 = pl.pallas_call(
        functools.partial(_trelu_kernel, tile_rows=tile_rows),
        out_shape=jax.ShapeDtypeStruct((rows, HW), x.dtype),
        grid=grid,
        in_specs=[
            pl.BlockSpec((rows, 1), lambda i: (0, 0)),        # resident |bias|
            pl.BlockSpec((tile_rows, HW), lambda i: (i, 0)),  # streamed x
        ],
        out_specs=pl.BlockSpec((tile_rows, HW), lambda i: (i, 0)),
        compiler_params=pltpu.CompilerParams(
            dimension_semantics=("parallel",),
            vmem_limit_bytes=32 << 20,
        ),
    )(a_row, x2)

    return out2.reshape(N, C, H, W)


if __name__ == "__main__":
    key = jax.random.PRNGKey(0)
    k_x, k_b = jax.random.split(key)

    N, C, H, W = 2, 4, 16, 16

    x = jax.random.normal(k_x, (N, C, H, W), dtype=jnp.float32)
    # Deterministic synthetic init for the trainable bias, shape (1, C, 1, 1).
    bias = 0.1 * jax.random.normal(k_b, (1, C, 1, 1), dtype=jnp.float32)

    y = trelu_with_trainable_bias(x, bias)
    y = jax.block_until_ready(y)

    # Reference check against the exact PyTorch formula.
    a = jnp.abs(bias)
    r = jnp.maximum(x - a, 0.0)
    y_ref = r + a * jnp.sign(r)
    assert y.shape == (N, C, H, W)
    assert jnp.allclose(y, y_ref, atol=1e-6, rtol=1e-6)

    print("KERNEL_OK")
</pallas_src>

<mosaic_0001>
module attributes {stable_mosaic.version = 11 : i64} {
  func.func @_trelu_kernel(%arg0: i32, %arg1: memref<8x1xf32, #tpu.memory_space<vmem>>, %arg2: memref<8x256xf32, #tpu.memory_space<vmem>>, %arg3: memref<8x256xf32, #tpu.memory_space<vmem>>) attributes {dimension_semantics = [#tpu.dimension_semantics<parallel>], iteration_bounds = array<i64: 1>, scalar_prefetch = 0 : i64, scratch_operands = 0 : i64, tpu.core_type = #tpu.core_type<tc>, window_params = [{pipeline_mode = #tpu.pipeline_mode<synchronous>, transform_indices = @transform_0, window_bounds = array<i64: 8, 1>}, {transform_indices = @transform_1, window_bounds = array<i64: 8, 256>}, {transform_indices = @transform_2, window_bounds = array<i64: 8, 256>}]} {
    %c8_i32 = arith.constant 8 : i32
    %0 = arith.muli %arg0, %c8_i32 : i32
    %1 = tpu.assume_multiple %0, 8 : i32
    %2 = arith.index_cast %1 : i32 to index
    %c0 = arith.constant 0 : index
    %3 = vector.load %arg1[%2, %c0] : memref<8x1xf32, #tpu.memory_space<vmem>>, vector<8x1xf32>
    %c0_0 = arith.constant 0 : index
    %c0_1 = arith.constant 0 : index
    %4 = vector.load %arg2[%c0_0, %c0_1] : memref<8x256xf32, #tpu.memory_space<vmem>>, vector<8x256xf32>
    %5 = vector.broadcast %3 : vector<8x1xf32> to vector<8x256xf32>
    %6 = arith.cmpf ogt, %4, %5 : vector<8x256xf32>
    %cst = arith.constant 0.000000e+00 : f32
    %7 = vector.broadcast %cst : f32 to vector<8x256xf32>
    %8 = arith.select %6, %4, %7 : vector<8x256xi1>, vector<8x256xf32>
    %c0_2 = arith.constant 0 : index
    %c0_3 = arith.constant 0 : index
    %9 = vector.load %arg3[%c0_2, %c0_3] : memref<8x256xf32, #tpu.memory_space<vmem>>, vector<8x256xf32>
    tpu.vector_store %arg3[%c0_2, %c0_3], %8 {strides = array<i32>} : memref<8x256xf32, #tpu.memory_space<vmem>>, vector<8x256xf32>,
    return
  }
  func.func @transform_0(%arg0: i32) -> (i32, i32) {
    %c0_i32 = arith.constant 0 : i32
    %c0_i32_0 = arith.constant 0 : i32
    %c0_i32_1 = arith.constant 0 : i32
    return %c0_i32, %c0_i32_0 : i32, i32
  }
  func.func @transform_1(%arg0: i32) -> (i32, i32) {
    %c0_i32 = arith.constant 0 : i32
    %c0_i32_0 = arith.constant 0 : i32
    return %arg0, %c0_i32 : i32, i32
  }
  func.func @transform_2(%arg0: i32) -> (i32, i32) {
    %c0_i32 = arith.constant 0 : i32
    %c0_i32_0 = arith.constant 0 : i32
    return %arg0, %c0_i32 : i32, i32
  }
}

</mosaic_0001>

<bundles_post_ra>
// kernel: tpu_custom_call.1
= control target key start
LH: loop header
LB: loop body
LE: loop exit
PB: predicated region body
PF: predicated region fallthrough
CT: control target
= control target key end

     0   :  { %7 = vsyncpa [#allocation3], 0  ;;  %s142_s0 = inlined_call_operand.vmem [shape: f32[8,1], index: 0, kind: input, shape index: {}]   ;;  %s143_s1 = inlined_call_operand.hbm [shape: f32[8,256], index: 1, kind: input, shape index: {}]   ;;  %s144_s2 = inlined_call_operand.hbm [shape: f32[8,256], index: 2, kind: output, shape index: {}]  }
   0x1   :  { %8 = vsyncpa [#allocation4], 0  ;;  %s16_s11 = sshll.u32 %s143_s1, 4  ;;  %s115_s12 = smov [#allocation2]   ;;  %s17_s11 = int_to_ptr.hbm [resolvable:$true] %s16_s11 }
   0x2   :  { %s18_s13 = sshll.u32 %s115_s12, 4  ;;  %s19_s13 = int_to_ptr.vmem [resolvable:$true] %s18_s13 }
   0x3   :  { %21 = dma.hbm_to_vmem [thread:$0]  %s17_s11, 256, %s19_s13, [#allocation3]  }
   0x4   :  { %111 = dma.done.wait [#allocation3], 256  }
   0x5   :  { %112 = vsyncadd [#allocation3], 4294967040  ;;  %v116_v0 = vmov 0   ;;  %v28_v1 = vld [vmem:[%s142_s0] sm:$0xff]  ;;  %v30_v3 = vld [vmem:[#allocation2 + $0x8] sm:$0xff]  ;;  %s117_s16 = smov [#allocation5]  }
   0x6   :  { %62 = vset.pattern.permute.xlu0 %v116_v0  ;;  %v29_v2 = vld [vmem:[#allocation2] sm:$0xff]  ;;  %s47_s17 = sshll.u32 %s117_s16, 4  ;;  %s49_s19 = sshll.u32 %s144_s2, 4  ;;  %s48_s17 = int_to_ptr.vmem [resolvable:$true] %s47_s17  ;;  %s50_s19 = int_to_ptr.hbm [resolvable:$true] %s49_s19 }
   0x7   :  { %33 = vperm.xlu0 %62, %v28_v1  }
  0x79   :  { %v34_v4 = vpop.permute.xlu0 %33 }
  0x7a   :  { %vm36_vm0 = vcmp.gt.f32.partialorder %v29_v2, %v34_v4  ;;  %vm37_vm1 = vcmp.gt.f32.partialorder %v30_v3, %v34_v4 }
  0x7b   :  { %v38_v5 = vsel %vm36_vm0, %v29_v2, 0.0  ;;  %v39_v6 = vsel %vm37_vm1, %v30_v3, 0.0 }
  0x7c   :  { %40 = vst [vmem:[#allocation5] sm:$0xff] %v38_v5 }
  0x7d   :  { %41 = vst [vmem:[#allocation5 + $0x8] sm:$0xff] %v39_v6 }
  0x7e   :  { %52 = dma.vmem_to_hbm [thread:$0]  %s48_s17, 256, %s50_s19, [#allocation4]  }
  0x7f   :  { %113 = dma.done.wait [#allocation4], 256  }
  0x80   :  { %114 = vsyncadd [#allocation4], 4294967040 }
  0x81   :  { %57 = vsyncpa [#allocation3], 1 }
  0x82   :  { %58 = vsyncpa [#allocation4], 1 }

</bundles_post_ra>
